<compile_context>
chip_gen: v5e
topology: v5e:2x2
jax: 0.10.0
libtpu: 0.0.40
codegen_flags: <defaults>
</compile_context>

<pallas_src>
import functools

import jax
import jax.numpy as jnp
from jax.experimental import pallas as pl
from jax.experimental.pallas import tpu as pltpu


def _round_up(x, m):
    return (x + m - 1) // m * m


def _pick_tm(m):
    # Block M dim is either the full (16-rounded) M or 256-row tiles.
    return min(256, _round_up(m, 16))


def _pick_tk(kp):
    for c in (1024, 768, 512, 384, 256, 128):
        if kp % c == 0:
            return c
    return 128


def _pick_tn(np_):
    for c in (512, 256, 128):
        if np_ % c == 0:
            return c
    return 128


# --------------------------------------------------------------------------
# Pallas kernels
# --------------------------------------------------------------------------

def _mm_bias_kernel(a_ref, b_ref, c_ref, o_ref, acc_ref, *, relu):
    """out = act((A @ B) + bias); grid = (M, N, K), K is the reduction axis."""
    @pl.when(pl.program_id(2) == 0)
    def _():
        acc_ref[...] = jnp.zeros_like(acc_ref)

    acc_ref[...] += jnp.dot(a_ref[...], b_ref[...],
                            preferred_element_type=jnp.float32)

    @pl.when(pl.program_id(2) == pl.num_programs(2) - 1)
    def _():
        y = acc_ref[...] + c_ref[...]
        if relu:
            y = jnp.maximum(y, 0.0)
        o_ref[...] = y.astype(o_ref.dtype)


def _mm_bias_res_kernel(a_ref, b_ref, c_ref, r_ref, o_ref, acc_ref, *, relu):
    """out = act((A @ B) + bias + residual); residual fused in the epilogue."""
    @pl.when(pl.program_id(2) == 0)
    def _():
        acc_ref[...] = jnp.zeros_like(acc_ref)

    acc_ref[...] += jnp.dot(a_ref[...], b_ref[...],
                            preferred_element_type=jnp.float32)

    @pl.when(pl.program_id(2) == pl.num_programs(2) - 1)
    def _():
        y = acc_ref[...] + c_ref[...] + r_ref[...].astype(jnp.float32)
        if relu:
            y = jnp.maximum(y, 0.0)
        o_ref[...] = y.astype(o_ref.dtype)


def _max9_kernel(x_ref, o_ref):
    # x_ref: (9, tm, C) -> running max over the 9 pooling taps.
    o_ref[...] = jnp.max(x_ref[...], axis=0)


def _mean_kernel(x_ref, o_ref):
    # x_ref: (8, HW, C) -> (8, C) mean over spatial.
    o_ref[...] = jnp.mean(x_ref[...].astype(jnp.float32), axis=1)


# --------------------------------------------------------------------------
# Pallas wrappers
# --------------------------------------------------------------------------

def _matmul_bias_act(a, b_p, bias_p, relu, residual=None):
    """a:(M,K) bf16, b_p:(Kp,Np) bf16 (pre-padded, BN-scale folded),
    bias_p:(1,Np) f32, residual:(M,Ncout) or None -> (Mp,Np) bf16."""
    M, K = a.shape
    Kp, Np = b_p.shape
    tm = _pick_tm(M)
    Mp = _round_up(M, tm)
    tk = _pick_tk(Kp)
    tn = _pick_tn(Np)

    a_p = a.astype(jnp.bfloat16)
    if Mp != M or Kp != K:
        a_p = jnp.pad(a_p, ((0, Mp - M), (0, Kp - K)))

    in_specs = [
        pl.BlockSpec((tm, tk), lambda i, j, k: (i, k)),
        pl.BlockSpec((tk, tn), lambda i, j, k: (k, j)),
        pl.BlockSpec((1, tn), lambda i, j, k: (0, j)),
    ]
    operands = [a_p, b_p, bias_p]

    if residual is not None:
        rm, rn = residual.shape
        r_p = residual.astype(jnp.bfloat16)
        if Mp != rm or Np != rn:
            r_p = jnp.pad(r_p, ((0, Mp - rm), (0, Np - rn)))
        in_specs.append(pl.BlockSpec((tm, tn), lambda i, j, k: (i, j)))
        operands.append(r_p)
        kernel = functools.partial(_mm_bias_res_kernel, relu=relu)
    else:
        kernel = functools.partial(_mm_bias_kernel, relu=relu)

    return pl.pallas_call(
        kernel,
        out_shape=jax.ShapeDtypeStruct((Mp, Np), jnp.bfloat16),
        grid_spec=pltpu.PrefetchScalarGridSpec(
            num_scalar_prefetch=0,
            grid=(Mp // tm, Np // tn, Kp // tk),
            in_specs=in_specs,
            out_specs=pl.BlockSpec((tm, tn), lambda i, j, k: (i, j)),
            scratch_shapes=[pltpu.VMEM((tm, tn), jnp.float32)],
        ),
        compiler_params=pltpu.CompilerParams(
            dimension_semantics=("parallel", "parallel", "arbitrary"),
            vmem_limit_bytes=32 * 1024 * 1024),
    )(*operands)


@jax.jit
def _max_over_taps(stacked):
    # stacked: (9, M, C) -> (M, C), row-tiled running max over the 9 taps.
    _, M, C = stacked.shape
    tm = min(512, _round_up(M, 16))
    Mp = _round_up(M, tm)
    if Mp != M:
        stacked = jnp.pad(stacked, ((0, 0), (0, Mp - M), (0, 0)))
    out = pl.pallas_call(
        _max9_kernel,
        out_shape=jax.ShapeDtypeStruct((Mp, C), stacked.dtype),
        grid_spec=pltpu.PrefetchScalarGridSpec(
            num_scalar_prefetch=0,
            grid=(Mp // tm,),
            in_specs=[pl.BlockSpec((9, tm, C), lambda i: (0, i, 0))],
            out_specs=pl.BlockSpec((tm, C), lambda i: (i, 0)),
        ),
        compiler_params=pltpu.CompilerParams(
            dimension_semantics=("parallel",)),
    )(stacked)
    return out[:M]


@jax.jit
def _global_avg_pool(x):
    # x: (N, HW, C) bf16 -> (N, C) f32
    N, HW, C = x.shape
    Np = _round_up(N, 8)
    if Np != N:
        x = jnp.pad(x, ((0, Np - N), (0, 0), (0, 0)))
    out = pl.pallas_call(
        _mean_kernel,
        out_shape=jax.ShapeDtypeStruct((Np, C), jnp.float32),
        grid_spec=pltpu.PrefetchScalarGridSpec(
            num_scalar_prefetch=0,
            grid=(Np // 8,),
            in_specs=[pl.BlockSpec((8, HW, C), lambda i: (i, 0, 0))],
            out_specs=pl.BlockSpec((8, C), lambda i: (i, 0)),
        ),
        compiler_params=pltpu.CompilerParams(
            dimension_semantics=("parallel",)),
    )(x)
    return out[:N]


# --------------------------------------------------------------------------
# Conv / pool glue (plain JAX pad/slice/reshape); matmul runs in Pallas
# --------------------------------------------------------------------------

def _im2col(x, kh, kw, stride, pad):
    # x: (N, H, W, C) bf16 -> patches (N*OH*OW, KH*KW*C), K ordered (kh, kw, c)
    n, h, w, c = x.shape
    if pad > 0:
        x = jnp.pad(x, ((0, 0), (pad, pad), (pad, pad), (0, 0)))
    oh = (h + 2 * pad - kh) // stride + 1
    ow = (w + 2 * pad - kw) // stride + 1
    if kh == 1 and kw == 1:
        patches = x[:, ::stride, ::stride, :]
        return patches.reshape(n * oh * ow, c), oh, ow
    cols = []
    for i in range(kh):
        for j in range(kw):
            cols.append(x[:, i:i + (oh - 1) * stride + 1:stride,
                          j:j + (ow - 1) * stride + 1:stride, :])
    patches = jnp.stack(cols, axis=3)                 # (N, OH, OW, KH*KW, C)
    return patches.reshape(n * oh * ow, kh * kw * c), oh, ow


@functools.partial(
    jax.jit, static_argnames=("kh", "kw", "stride", "pad", "relu", "cout"))
def _conv_impl(x, w_p, bias_p, residual, *, kh, kw, stride, pad, relu, cout):
    n = x.shape[0]
    patches, oh, ow = _im2col(x, kh, kw, stride, pad)
    res2d = None
    if residual is not None:
        res2d = residual.reshape(n * oh * ow, cout)
    out = _matmul_bias_act(patches, w_p, bias_p, relu, res2d)
    out = out[:n * oh * ow, :cout]
    return out.reshape(n, oh, ow, cout)


def conv_bn_act(x, cp, relu, residual=None):
    return _conv_impl(x, cp["w"], cp["b"], residual,
                      kh=cp["kh"], kw=cp["kw"], stride=cp["stride"],
                      pad=cp["pad"], relu=relu, cout=cp["cout"])


@jax.jit
def maxpool_3x3_s2(x):
    n, h, w, c = x.shape
    pad = 1
    xp = jnp.pad(x, ((0, 0), (pad, pad), (pad, pad), (0, 0)),
                 constant_values=float("-inf"))
    oh = (h + 2 * pad - 3) // 2 + 1
    ow = (w + 2 * pad - 3) // 2 + 1
    cols = []
    for i in range(3):
        for j in range(3):
            cols.append(xp[:, i:i + (oh - 1) * 2 + 1:2,
                           j:j + (ow - 1) * 2 + 1:2, :])
    stacked = jnp.stack(cols, axis=0).reshape(9, n * oh * ow, c)
    out = _max_over_taps(stacked)
    return out.reshape(n, oh, ow, c)


# --------------------------------------------------------------------------
# wide_resnet101_2 structure (Bottleneck, layers=[3,4,23,3], width_per_group=128)
# --------------------------------------------------------------------------

def _bottleneck(x, p):
    out = conv_bn_act(x, p["conv1"], True)
    out = conv_bn_act(out, p["conv2"], True)
    if "ds" in p:
        identity = conv_bn_act(x, p["ds"], False)
    else:
        identity = x
    # conv3 + BN-bias + residual add + ReLU fused in one matmul epilogue.
    return conv_bn_act(out, p["conv3"], True, residual=identity)


def wresnet101fc_forward(x_nchw, params):
    """Equivalent of WResnet101Fc.forward: returns (N, 2048) features."""
    x = jnp.transpose(x_nchw, (0, 2, 3, 1)).astype(jnp.bfloat16)  # NCHW -> NHWC
    x = conv_bn_act(x, params["stem"], True)
    x = maxpool_3x3_s2(x)
    for layer in params["layers"]:
        for p in layer:
            x = _bottleneck(x, p)
    n, h, w, c = x.shape
    feat = _global_avg_pool(x.reshape(n, h * w, c))                # (N, 2048) f32
    return feat                                                     # fc = Identity


# --------------------------------------------------------------------------
# Deterministic parameter init + one-time preprocessing
# (fold eval-mode BN into weights/bias, transpose to (K, Cout), pad, cast bf16)
# --------------------------------------------------------------------------

def _fold_conv_bn(key, cout, cin, kh, kw, stride, pad):
    fan_in = cin * kh * kw
    w = jax.random.normal(key, (cout, cin, kh, kw), jnp.float32) / jnp.sqrt(
        jnp.float32(fan_in))
    # eval-mode BatchNorm stats (deterministic init): gamma=1, beta=0, mean=0, var=1
    gamma = jnp.ones((cout,), jnp.float32)
    beta = jnp.zeros((cout,), jnp.float32)
    mean = jnp.zeros((cout,), jnp.float32)
    var = jnp.ones((cout,), jnp.float32)
    scale = gamma / jnp.sqrt(var + 1e-5)
    bias = beta - mean * scale

    w_mat = jnp.transpose(w, (2, 3, 1, 0)).reshape(kh * kw * cin, cout)
    w_mat = w_mat * scale[None, :]                  # fold BN scale into columns
    K = kh * kw * cin
    Kp = _round_up(K, 128)
    Np = _round_up(cout, 128)
    w_p = jnp.zeros((Kp, Np), jnp.bfloat16).at[:K, :cout].set(
        w_mat.astype(jnp.bfloat16))
    b_p = jnp.zeros((1, Np), jnp.float32).at[0, :cout].set(bias)
    return {"w": w_p, "b": b_p, "kh": kh, "kw": kw, "stride": stride,
            "pad": pad, "cout": cout}


def init_wresnet101_params(key):
    layers_cfg = [3, 4, 23, 3]
    width_per_group = 128   # wide_resnet101_2: 64 * 2
    expansion = 4
    keys = iter(jax.random.split(key, 256))

    params = {"stem": _fold_conv_bn(next(keys), 64, 3, 7, 7, 2, 3)}
    inplanes = 64
    all_layers = []
    for planes, nblocks, first_stride in zip([64, 128, 256, 512], layers_cfg,
                                             [1, 2, 2, 2]):
        width = planes * width_per_group // 64
        layer_params = []
        for b in range(nblocks):
            s = first_stride if b == 0 else 1
            p = {
                "conv1": _fold_conv_bn(next(keys), width, inplanes, 1, 1, 1, 0),
                "conv2": _fold_conv_bn(next(keys), width, width, 3, 3, s, 1),
                "conv3": _fold_conv_bn(next(keys), planes * expansion, width,
                                       1, 1, 1, 0),
            }
            if s != 1 or inplanes != planes * expansion:
                p["ds"] = _fold_conv_bn(next(keys), planes * expansion,
                                        inplanes, 1, 1, s, 0)
            layer_params.append(p)
            inplanes = planes * expansion
        all_layers.append(layer_params)
    params["layers"] = all_layers
    return params


# --------------------------------------------------------------------------

if __name__ == "__main__":
    key = jax.random.PRNGKey(0)
    pkey, xkey = jax.random.split(key)
    params = init_wresnet101_params(pkey)

    # Small input, NCHW like PyTorch: 3 channels, 32x32 spatial -> 2048 features
    x = jax.random.normal(xkey, (2, 3, 32, 32), jnp.float32)

    feats = wresnet101fc_forward(x, params)
    feats = jax.block_until_ready(feats)

    assert feats.shape == (2, 2048), feats.shape
    assert bool(jnp.all(jnp.isfinite(feats)))
    print("KERNEL_OK")
</pallas_src>

<mosaic_0001>
module attributes {stable_mosaic.version = 11 : i64} {
  func.func @_mm_bias_kernel(%arg0: i32, %arg1: i32, %arg2: i32, %arg3: memref<256x256xbf16, #tpu.memory_space<vmem>>, %arg4: memref<256x128xbf16, #tpu.memory_space<vmem>>, %arg5: memref<1x128xf32, #tpu.memory_space<vmem>>, %arg6: memref<256x128xbf16, #tpu.memory_space<vmem>>, %arg7: memref<256x128xf32, #tpu.memory_space<vmem>>) attributes {dimension_semantics = [#tpu.dimension_semantics<parallel>, #tpu.dimension_semantics<parallel>, #tpu.dimension_semantics<arbitrary>], iteration_bounds = array<i64: 2, 1, 1>, scalar_prefetch = 0 : i64, scratch_operands = 1 : i64, tpu.core_type = #tpu.core_type<tc>, window_params = [{transform_indices = @transform_0, window_bounds = array<i64: 256, 256>}, {transform_indices = @transform_1, window_bounds = array<i64: 256, 128>}, {transform_indices = @transform_2, window_bounds = array<i64: 1, 128>}, {transform_indices = @transform_3, window_bounds = array<i64: 256, 128>}]} {
    %c0_i32 = arith.constant 0 : i32
    %0 = arith.cmpi eq, %arg2, %c0_i32 : i32
    %1 = arith.extui %0 : i1 to i32
    %c0_i32_0 = arith.constant 0 : i32
    %2 = arith.cmpi ne, %1, %c0_i32_0 : i32
    scf.if %2 {
      %cst_10 = arith.constant 0.000000e+00 : f32
      %12 = vector.broadcast %cst_10 : f32 to vector<256x128xf32>
      %c0_11 = arith.constant 0 : index
      %c0_12 = arith.constant 0 : index
      %13 = vector.load %arg7[%c0_11, %c0_12] : memref<256x128xf32, #tpu.memory_space<vmem>>, vector<256x128xf32>
      tpu.vector_store %arg7[%c0_11, %c0_12], %12 {strides = array<i32>} : memref<256x128xf32, #tpu.memory_space<vmem>>, vector<256x128xf32>,
    } else {
    }
    %c0 = arith.constant 0 : index
    %c0_1 = arith.constant 0 : index
    %3 = vector.load %arg7[%c0, %c0_1] : memref<256x128xf32, #tpu.memory_space<vmem>>, vector<256x128xf32>
    %c0_2 = arith.constant 0 : index
    %c0_3 = arith.constant 0 : index
    %4 = vector.load %arg3[%c0_2, %c0_3] : memref<256x256xbf16, #tpu.memory_space<vmem>>, vector<256x256xbf16>
    %c0_4 = arith.constant 0 : index
    %c0_5 = arith.constant 0 : index
    %5 = vector.load %arg4[%c0_4, %c0_5] : memref<256x128xbf16, #tpu.memory_space<vmem>>, vector<256x128xbf16>
    %cst = arith.constant dense<0.000000e+00> : vector<256x128xf32>
    %6 = tpu.matmul %4, %5, %cst {dimension_numbers = #tpu.dot_dimension_numbers<[1], [0], [0], [1], [0, 0, 1, 1], [], []>} : vector<256x256xbf16>, vector<256x128xbf16>, vector<256x128xf32> -> vector<256x128xf32>
    %7 = arith.addf %3, %6 : vector<256x128xf32>
    %c0_6 = arith.constant 0 : index
    %c0_7 = arith.constant 0 : index
    %8 = vector.load %arg7[%c0_6, %c0_7] : memref<256x128xf32, #tpu.memory_space<vmem>>, vector<256x128xf32>
    tpu.vector_store %arg7[%c0_6, %c0_7], %7 {strides = array<i32>} : memref<256x128xf32, #tpu.memory_space<vmem>>, vector<256x128xf32>,
    %c0_i32_8 = arith.constant 0 : i32
    %9 = arith.cmpi eq, %arg2, %c0_i32_8 : i32
    %10 = arith.extui %9 : i1 to i32
    %c0_i32_9 = arith.constant 0 : i32
    %11 = arith.cmpi ne, %10, %c0_i32_9 : i32
    scf.if %11 {
      %c0_10 = arith.constant 0 : index
      %c0_11 = arith.constant 0 : index
      %12 = vector.load %arg7[%c0_10, %c0_11] : memref<256x128xf32, #tpu.memory_space<vmem>>, vector<256x128xf32>
      %c0_12 = arith.constant 0 : index
      %c0_13 = arith.constant 0 : index
      %13 = vector.load %arg5[%c0_12, %c0_13] : memref<1x128xf32, #tpu.memory_space<vmem>>, vector<1x128xf32>
      %14 = vector.broadcast %13 : vector<1x128xf32> to vector<256x128xf32>
      %15 = arith.addf %12, %14 : vector<256x128xf32>
      %cst_14 = arith.constant 0.000000e+00 : f32
      %16 = vector.broadcast %cst_14 : f32 to vector<256x128xf32>
      %17 = arith.maximumf %15, %16 : vector<256x128xf32>
      %18 = arith.truncf %17 : vector<256x128xf32> to vector<256x128xbf16>
      %c0_15 = arith.constant 0 : index
      %c0_16 = arith.constant 0 : index
      %19 = vector.load %arg6[%c0_15, %c0_16] : memref<256x128xbf16, #tpu.memory_space<vmem>>, vector<256x128xbf16>
      tpu.vector_store %arg6[%c0_15, %c0_16], %18 {strides = array<i32>} : memref<256x128xbf16, #tpu.memory_space<vmem>>, vector<256x128xbf16>,
    } else {
    }
    return
  }
  func.func @transform_0(%arg0: i32, %arg1: i32, %arg2: i32) -> (i32, i32) {
    %c0_i32 = arith.constant 0 : i32
    return %arg0, %arg2 : i32, i32
  }
  func.func @transform_1(%arg0: i32, %arg1: i32, %arg2: i32) -> (i32, i32) {
    %c0_i32 = arith.constant 0 : i32
    return %arg2, %arg1 : i32, i32
  }
  func.func @transform_2(%arg0: i32, %arg1: i32, %arg2: i32) -> (i32, i32) {
    %c0_i32 = arith.constant 0 : i32
    %c0_i32_0 = arith.constant 0 : i32
    return %c0_i32, %arg1 : i32, i32
  }
  func.func @transform_3(%arg0: i32, %arg1: i32, %arg2: i32) -> (i32, i32) {
    %c0_i32 = arith.constant 0 : i32
    return %arg0, %arg1 : i32, i32
  }
}

</mosaic_0001>

<bundles_post_ra>
// kernel: _conv_impl.1
= control target key start
LH: loop header
LB: loop body
LE: loop exit
PB: predicated region body
PF: predicated region fallthrough
CT: control target
= control target key end

     0   :  { %8 = vsyncpa [#allocation4], 0  ;;  %s1983_s0 = inlined_call_operand.vmem [shape: bf16[512,256], index: 0, kind: input, shape index: {}]   ;;  %s1984_s1 = inlined_call_operand.vmem [shape: bf16[256,128], index: 1, kind: input, shape index: {}]   ;;  %s1985_s2 = inlined_call_operand.vmem [shape: f32[1,128], index: 2, kind: input, shape index: {}]   ;;  %s1986_s3 = inlined_call_operand.hbm [shape: bf16[512,128], index: 3, kind: output, shape index: {}]  }
   0x1   :  { %10 = vsyncpa [#allocation4 + $0x1], 0  ;;  %s1713_s12 = smov 0   ;;  %s1715_s13 = smov 0  }
   0x2   :  { %s1717_s14 = smov 0   ;;  %s1719_s15 = smov 0  }
   0x3   :  { %s1721_s16 = smov 0   ;;  %s1723_s17 = smov 0  }
   0x4 LB: > { %s1184_s18 = sadd.s32 4294967295, %s1689_s17   ;;  %s1185_s19 = sadd.s32 4294967294, %s1689_s17   ;;  %s1689_s17 = sphi %s1723_s17, %s16_s17   ;;  %s1685_s16 = sphi %s1721_s16, %s1993_s16   ;;  %s1681_s15 = sphi %s1719_s15, %s1992_s15   ;;  %s1677_s14 = sphi %s1717_s14, %s1991_s14   ;;  %s1673_s13 = sphi %s1715_s13, %s1990_s13   ;;  %s1669_s12 = sphi %s1713_s12, %s1989_s12  }
   0x5   : > { %s35_s20 = sadd.s32 1, %s1685_s16  ;;  %s126_s21 = sadd.s32 1, %s1677_s14 }
   0x6   : > { %p37_p0 = scmp.ge.s32.totalorder %s35_s20, 2  ;;  %p136_p1 = scmp.ne.s32.totalorder %s1677_s14, %s1673_s13 }
   0x7   : > { %p137_p2 = scmp.eq.s32.totalorder %s1184_s18, 1  ;;  %p142_p3 = scmp.ne.s32.totalorder %s1673_s13, %s1669_s12 }
   0x8   : > { %s1995_s20 = smov (%p37_p0, %s35_s20), 0  ;;  %p143_p5 = scmp.eq.s32.totalorder %s1185_s19, 1 }
   0x9   : > { %p1753_p4 = por %p137_p2, %p136_p1  ;;  %s121_s23 = ssub.s32 %s1685_s16, %s1995_s20 }
   0xa   : > { %p1190_p6 = scmp.ge.s32.totalorder %s1689_s17, 1  ;;  %p124_p7 = scmp.eq.s32.totalorder %s121_s23, 0 }
   0xb   : > { %p1760_p8 = por %p143_p5, %p142_p3  ;;  %p194_p9 = scmp.lt.s32.totalorder %s1689_s17, 3 }
   0xc   : > { %s1766_s25 = scalar_select %p124_p7, %s1677_s14, %s126_s21  }
   0xd   : > { %p195_p10 = pnand %p1190_p6, %p194_p9 }
   0xe   : > { %s1192_s11 = sshll.u32 (!%p195_p10), %s1681_s15, 5  ;;  %s231_s4 = sand.u32 (!%p195_p10), 1, %s1673_s13  }
   0xf   : > { %198 = sbr.rel (%p195_p10) target bundleno = 317 (0x13d), region = 32  ;;  %p236_p11 = scmp.lt.s32.totalorder (!%p195_p10), %s1192_s11, 63 }
  0x10   : > { %s1191_s5 = sshll.u32 (!%p195_p10), %s231_s4, 7  ;;  %s1631_s27 = scalar_lea.hbm (!%p195_p10), %s1986_s3, 256 }
  0x11   : > { %s1897_s6 = scalar_lea.vmem (!%p195_p10), [#allocation3], %s1191_s5 }
  0x12   : > { %s1070_s18 = sshll.u32 (!%p195_p10), %s1897_s6, 4  ;;  %s1071_s18 = int_to_ptr.vmem [resolvable:$true] %s1070_s18 }
  0x14   : > { %v1432_v0 = vld [vmem:[%s1984_s1 + $0x38] sm:$0xff]  ;;  %v1431_v2 = vld [vmem:[%s1984_s1 + $0x30] sm:$0xff]  ;;  %v1430_v4 = vld [vmem:[%s1984_s1 + $0x28] sm:$0xff]  ;;  %s1997_s11 = smov (!%p236_p11, %s1192_s11), 63 }
  0x15   : > { %v1440_v1 = vld [vmem:[%s1984_s1 + $0x78] sm:$0xff]  ;;  %647 = vmatpush.bf16.msra.mxu0 %v1432_v0  ;;  %1537 = vmatpush.bf16.msra.mxu2 %v1432_v0  ;;  %v1439_v3 = vld [vmem:[%s1984_s1 + $0x70] sm:$0xff]  ;;  %v1438_v5 = vld [vmem:[%s1984_s1 + $0x68] sm:$0xff]  ;;  %s1392_s7 = sshll.u32 %s1997_s11, 3 }
  0x16   : > { %736 = vmatpush.bf16.msra.mxu1 %v1440_v1  ;;  %1545 = vmatpush.bf16.msra.mxu3 %v1440_v1  ;;  %v1429_v6 = vld [vmem:[%s1984_s1 + $0x20] sm:$0xff]  ;;  %v1428_v8 = vld [vmem:[%s1984_s1 + $0x18] sm:$0xff]  ;;  %v1427_v10 = vld [vmem:[%s1984_s1 + $0x10] sm:$0xff]  ;;  %s1811_s19 = scalar_lea.vmem %s1983_s0, %s1392_s7  ;;  %s1441_s7 = sshll.u32 %s1681_s15, 7 }
  0x17   : > { %v1437_v7 = vld [vmem:[%s1984_s1 + $0x60] sm:$0xff]  ;;  %v1436_v9 = vld [vmem:[%s1984_s1 + $0x58] sm:$0xff]  ;;  %v1435_v11 = vld [vmem:[%s1984_s1 + $0x50] sm:$0xff]  ;;  %s1069_s10 = scalar_lea.hbm %s1986_s3, %s1441_s7 }
  0x18   : > { %v1426_v12 = vld [vmem:[%s1984_s1 + $0x8] sm:$0xff]  ;;  %v1425_v14 = vld [vmem:[%s1984_s1] sm:$0xff]  ;;  %v1205_v28 = vld [vmem:[%s1811_s19 + $0x10] sm:$0xf]  ;;  %s1072_s15 = sshll.u32 %s1069_s10, 4  ;;  %s1073_s15 = int_to_ptr.hbm [resolvable:$true] %s1072_s15 }
  0x19   : > { %648 = vmatpush.bf16.msra.mxu0 %v1431_v2  ;;  %1538 = vmatpush.bf16.msra.mxu2 %v1431_v2  ;;  %v1434_v13 = vld [vmem:[%s1984_s1 + $0x48] sm:$0xff]  ;;  %v1433_v15 = vld [vmem:[%s1984_s1 + $0x40] sm:$0xff]  ;;  %v1396_v29 = vld [vmem:[%s1811_s19 + $0x14] sm:$0xf0]  ;;  %s1625_s11 = sshra.s32 %s1073_s15, 4  ;;  %s1626_s11 = int_to_ptr.hbm [resolvable:$true] %s1625_s11 }
  0x1a   : > { %737 = vmatpush.bf16.msra.mxu1 %v1439_v3  ;;  %1546 = vmatpush.bf16.msra.mxu3 %v1439_v3  ;;  %v1197_v16 = vld [vmem:[%s1811_s19] sm:$0xf]  ;;  %v1394_v17 = vld [vmem:[%s1811_s19 + $0x4] sm:$0xf0]  ;;  %v1393_v20 = vld [vmem:[%s1811_s19 + $0x4] sm:$0xf]  ;;  %v1206_v36 = vor.u32 %v1396_v29, %v1205_v28  ;;  %p1632_p1 = scmp.lt.s32.totalorder %s1626_s11, %s1986_s3 }
  0x1b   : > { %v1261_v18 = vld [vmem:[%s1811_s19 + $0x80] sm:$0xf]  ;;  %v1410_v19 = vld [vmem:[%s1811_s19 + $0x84] sm:$0xf0]  ;;  %v1199_v21 = vld [vmem:[%s1811_s19 + $0x8] sm:$0xf0]  ;;  %v1198_v24 = vor.u32 %v1394_v17, %v1197_v16 }
  0x1c   : > { %v1409_v22 = vld [vmem:[%s1811_s19 + $0x84] sm:$0xf]  ;;  %v1263_v23 = vld [vmem:[%s1811_s19 + $0x88] sm:$0xf0]  ;;  %v1262_v25 = vor.u32 %v1410_v19, %v1261_v18  ;;  %v1202_v26 = vor.u32 %v1393_v20, %v1199_v21  ;;  %v1269_v30 = vld [vmem:[%s1811_s19 + $0x90] sm:$0xf] }
  0x1d   : > { %649 = vmatpush.bf16.msra.mxu0 %v1430_v4  ;;  %1539 = vmatpush.bf16.msra.mxu2 %v1430_v4  ;;  %v1266_v27 = vor.u32 %v1409_v22, %v1263_v23  ;;  %v1412_v31 = vld [vmem:[%s1811_s19 + $0x94] sm:$0xf0]  ;;  %v1395_v32 = vld [vmem:[%s1811_s19 + $0x14] sm:$0xf]  ;;  %v1207_v33 = vld [vmem:[%s1811_s19 + $0x18] sm:$0xf0] }
  0x1e   : > { %738 = vmatpush.bf16.msra.mxu1 %v1438_v5  ;;  %1547 = vmatpush.bf16.msra.mxu3 %v1438_v5  ;;  %v1411_v34 = vld [vmem:[%s1811_s19 + $0x94] sm:$0xf]  ;;  %v1271_v35 = vld [vmem:[%s1811_s19 + $0x98] sm:$0xf0]  ;;  %v1270_v37 = vor.u32 %v1412_v31, %v1269_v30  ;;  %v1210_v38 = vor.u32 %v1395_v32, %v1207_v33  ;;  %v1213_v40 = vld [vmem:[%s1811_s19 + $0x20] sm:$0xf] }
  0x1f   : > { %v1274_v39 = vor.u32 %v1411_v34, %v1271_v35  ;;  %v1398_v41 = vld [vmem:[%s1811_s19 + $0x24] sm:$0xf0]  ;;  %v1277_v42 = vld [vmem:[%s1811_s19 + $0xa0] sm:$0xf]  ;;  %v1397_v44 = vld [vmem:[%s1811_s19 + $0x24] sm:$0xf] }
  0x20   : > { %v1414_v43 = vld [vmem:[%s1811_s19 + $0xa4] sm:$0xf0]  ;;  %v1215_v45 = vld [vmem:[%s1811_s19 + $0x28] sm:$0xf0]  ;;  %v1413_v46 = vld [vmem:[%s1811_s19 + $0xa4] sm:$0xf]  ;;  %v1214_v48 = vor.u32 %v1398_v41, %v1213_v40 }
  0x21   : > { %650 = vmatpush.bf16.msra.mxu0 %v1429_v6  ;;  %1540 = vmatpush.bf16.msra.mxu2 %v1429_v6  ;;  %v1279_v47 = vld [vmem:[%s1811_s19 + $0xa8] sm:$0xf0]  ;;  %v1278_v49 = vor.u32 %v1414_v43, %v1277_v42  ;;  %v1218_v50 = vor.u32 %v1397_v44, %v1215_v45  ;;  %v1221_v52 = vld [vmem:[%s1811_s19 + $0x30] sm:$0xf]  ;;  %v1400_v53 = vld [vmem:[%s1811_s19 + $0x34] sm:$0xf0] }
  0x22   : > { %739 = vmatpush.bf16.msra.mxu1 %v1437_v7  ;;  %1548 = vmatpush.bf16.msra.mxu3 %v1437_v7  ;;  %v1282_v51 = vor.u32 %v1413_v46, %v1279_v47  ;;  %v1285_v54 = vld [vmem:[%s1811_s19 + $0xb0] sm:$0xf]  ;;  %v1416_v55 = vld [vmem:[%s1811_s19 + $0xb4] sm:$0xf0]  ;;  %v1399_v56 = vld [vmem:[%s1811_s19 + $0x34] sm:$0xf]  ;;  %v1222_v60 = vor.u32 %v1400_v53, %v1221_v52 }
  0x23   : > { %v1223_v57 = vld [vmem:[%s1811_s19 + $0x38] sm:$0xf0]  ;;  %v1415_v58 = vld [vmem:[%s1811_s19 + $0xb4] sm:$0xf]  ;;  %v1286_v61 = vor.u32 %v1416_v55, %v1285_v54  ;;  %v1229_v0 = vld [vmem:[%s1811_s19 + $0x40] sm:$0xf] }
  0x24   : > { %v1287_v59 = vld [vmem:[%s1811_s19 + $0xb8] sm:$0xf0]  ;;  %v1226_v62 = vor.u32 %v1399_v56, %v1223_v57  ;;  %v1402_v1 = vld [vmem:[%s1811_s19 + $0x44] sm:$0xf0]  ;;  %v1293_v2 = vld [vmem:[%s1811_s19 + $0xc0] sm:$0xf] }
  0x25   : > { %651 = vmatpush.bf16.msra.mxu0 %v1428_v8  ;;  %1541 = vmatpush.bf16.msra.mxu2 %v1428_v8  ;;  %v1290_v63 = vor.u32 %v1415_v58, %v1287_v59  ;;  %v1418_v3 = vld [vmem:[%s1811_s19 + $0xc4] sm:$0xf0]  ;;  %v1401_v4 = vld [vmem:[%s1811_s19 + $0x44] sm:$0xf]  ;;  %v1231_v5 = vld [vmem:[%s1811_s19 + $0x48] sm:$0xf0]  ;;  %v1230_v8 = vor.u32 %v1402_v1, %v1229_v0 }
  0x26   : > { %740 = vmatpush.bf16.msra.mxu1 %v1436_v9  ;;  %1549 = vmatpush.bf16.msra.mxu3 %v1436_v9  ;;  %v1417_v6 = vld [vmem:[%s1811_s19 + $0xc4] sm:$0xf]  ;;  %v1295_v7 = vld [vmem:[%s1811_s19 + $0xc8] sm:$0xf0]  ;;  %v1294_v9 = vor.u32 %v1418_v3, %v1293_v2  ;;  %v1403_v16 = vld [vmem:[%s1811_s19 + $0x54] sm:$0xf] }
  0x27   : > { %v1239_v17 = vld [vmem:[%s1811_s19 + $0x58] sm:$0xf0]  ;;  %v1419_v18 = vld [vmem:[%s1811_s19 + $0xd4] sm:$0xf]  ;;  %v1405_v28 = vld [vmem:[%s1811_s19 + $0x64] sm:$0xf] }
  0x28   : > { %v1303_v19 = vld [vmem:[%s1811_s19 + $0xd8] sm:$0xf0]  ;;  %v1242_v22 = vor.u32 %v1403_v16, %v1239_v17  ;;  %v1247_v29 = vld [vmem:[%s1811_s19 + $0x68] sm:$0xf0]  ;;  %v1421_v30 = vld [vmem:[%s1811_s19 + $0xe4] sm:$0xf] }
  0x29   : > { %652 = vmatpush.bf16.msra.mxu0 %v1427_v10  ;;  %1542 = vmatpush.bf16.msra.mxu2 %v1427_v10  ;;  %v1234_v10 = vor.u32 %v1401_v4, %v1231_v5  ;;  %v1306_v23 = vor.u32 %v1419_v18, %v1303_v19  ;;  %v1311_v31 = vld [vmem:[%s1811_s19 + $0xe8] sm:$0xf0]  ;;  %v1250_v34 = vor.u32 %v1405_v28, %v1247_v29  ;;  %v1407_v40 = vld [vmem:[%s1811_s19 + $0x74] sm:$0xf]  ;;  %v1255_v41 = vld [vmem:[%s1811_s19 + $0x78] sm:$0xf0] }
  0x2a   : > { %741 = vmatpush.bf16.msra.mxu1 %v1435_v11  ;;  %1550 = vmatpush.bf16.msra.mxu3 %v1435_v11  ;;  %v1298_v11 = vor.u32 %v1417_v6, %v1295_v7  ;;  %v1314_v35 = vor.u32 %v1421_v30, %v1311_v31  ;;  %v1423_v42 = vld [vmem:[%s1811_s19 + $0xf4] sm:$0xf]  ;;  %v1319_v43 = vld [vmem:[%s1811_s19 + $0xf8] sm:$0xf0]  ;;  %v1258_v46 = vor.u32 %v1407_v40, %v1255_v41  ;;  %s1627_s21 = scalar_lea.hbm %s1626_s11, 128 }
  0x2b   : > { %v1322_v47 = vor.u32 %v1423_v42, %v1319_v43  ;;  %p1628_p12 = scmp.ne.s32.totalorder %s1626_s11, %s1627_s21  ;;  %p1633_p2 = scmp.lt.s32.totalorder %s1631_s27, %s1627_s21 }
  0x2d   : > { %653 = vmatpush.bf16.msra.mxu0 %v1426_v12  ;;  %1543 = vmatpush.bf16.msra.mxu2 %v1426_v12  ;;  %v1237_v12 = vld [vmem:[%s1811_s19 + $0x50] sm:$0xf]  ;;  %p1629_p13 = pnand %p1628_p12, %p1753_p4  ;;  %p1634_p3 = por %p1633_p2, %p1632_p1 }
  0x2e   : > { %742 = vmatpush.bf16.msra.mxu1 %v1434_v13  ;;  %1551 = vmatpush.bf16.msra.mxu3 %v1434_v13  ;;  %v1404_v13 = vld [vmem:[%s1811_s19 + $0x54] sm:$0xf0] }
  0x2f   : > { %v1238_v20 = vor.u32 %v1404_v13, %v1237_v12  ;;  %p1630_p0 = pneg %p1629_p13 }
  0x31   : > { %654 = vmatpush.bf16.msra.mxu0 %v1425_v14  ;;  %1544 = vmatpush.bf16.msra.mxu2 %v1425_v14  ;;  %v1301_v14 = vld [vmem:[%s1811_s19 + $0xd0] sm:$0xf]  ;;  %p1635_p5 = pnand %p1634_p3, %p1630_p0 }
  0x32   : > { %743 = vmatpush.bf16.msra.mxu1 %v1433_v15  ;;  %1552 = vmatpush.bf16.msra.mxu3 %v1433_v15  ;;  %v1420_v15 = vld [vmem:[%s1811_s19 + $0xd4] sm:$0xf0] }
  0x33   : > { %v1302_v21 = vor.u32 %v1420_v15, %v1301_v14 }
  0x34   : > { %655 = vmatmul.bf16.vlgmr.msra.gmra.mxu0 %v1198_v24  ;;  %695 = vmatmul.bf16.vlgmr.msra.gmra.mxu2 %v1262_v25  ;;  %v1245_v24 = vld [vmem:[%s1811_s19 + $0x60] sm:$0xf]  ;;  %v1406_v25 = vld [vmem:[%s1811_s19 + $0x64] sm:$0xf0] }
  0x35   : > { %744 = vmatmul.bf16.vlgmr.msra.gmra.mxu1 %v1202_v26  ;;  %784 = vmatmul.bf16.vlgmr.msra.gmra.mxu3 %v1266_v27  ;;  %v1309_v26 = vld [vmem:[%s1811_s19 + $0xe0] sm:$0xf]  ;;  %v1422_v27 = vld [vmem:[%s1811_s19 + $0xe4] sm:$0xf0]  ;;  %v1246_v32 = vor.u32 %v1406_v25, %v1245_v24 }
  0x36   : > { %v1310_v33 = vor.u32 %v1422_v27, %v1309_v26 }
  0x44   : > { %660 = vmatmul.bf16.gmra.mxu0 %v1206_v36  ;;  %700 = vmatmul.bf16.gmra.mxu2 %v1270_v37  ;;  %v1253_v36 = vld [vmem:[%s1811_s19 + $0x70] sm:$0xf]  ;;  %v1408_v37 = vld [vmem:[%s1811_s19 + $0x74] sm:$0xf0] }
  0x45   : > { %749 = vmatmul.bf16.gmra.mxu1 %v1210_v38  ;;  %789 = vmatmul.bf16.gmra.mxu3 %v1274_v39  ;;  %v1317_v38 = vld [vmem:[%s1811_s19 + $0xf0] sm:$0xf]  ;;  %v1424_v39 = vld [vmem:[%s1811_s19 + $0xf4] sm:$0xf0]  ;;  %v1254_v44 = vor.u32 %v1408_v37, %v1253_v36  ;;  %s1057_s19 = scalar_lea.sflag [#allocation4], %s231_s4 }
  0x46   : > { %v1318_v45 = vor.u32 %v1424_v39, %v1317_v38 }
  0x54   : > { %665 = vmatmul.bf16.gmra.mxu0 %v1214_v48  ;;  %705 = vmatmul.bf16.gmra.mxu2 %v1278_v49 }
  0x55   : > { %754 = vmatmul.bf16.gmra.mxu1 %v1218_v50  ;;  %794 = vmatmul.bf16.gmra.mxu3 %v1282_v51  ;;  %v1889_v51 = vld [vmem:[%s1985_s2] ss:$0 sm:$0xff] }
  0x64   : > { %670 = vmatmul.bf16.gmra.mxu0 %v1222_v60  ;;  %710 = vmatmul.bf16.gmra.mxu2 %v1286_v61 }
  0x65   : > { %759 = vmatmul.bf16.gmra.mxu1 %v1226_v62  ;;  %799 = vmatmul.bf16.gmra.mxu3 %v1290_v63 }
  0x74   : > { %675 = vmatmul.bf16.gmra.mxu0 %v1230_v8  ;;  %715 = vmatmul.bf16.gmra.mxu2 %v1294_v9 }
  0x75   : > { %764 = vmatmul.bf16.gmra.mxu1 %v1234_v10  ;;  %804 = vmatmul.bf16.gmra.mxu3 %v1298_v11 }
  0x84   : > { %680 = vmatmul.bf16.gmra.mxu0 %v1238_v20  ;;  %720 = vmatmul.bf16.gmra.mxu2 %v1302_v21 }
  0x85   : > { %769 = vmatmul.bf16.gmra.mxu1 %v1242_v22  ;;  %809 = vmatmul.bf16.gmra.mxu3 %v1306_v23 }
  0x94   : > { %685 = vmatmul.bf16.gmra.mxu0 %v1246_v32  ;;  %725 = vmatmul.bf16.gmra.mxu2 %v1310_v33 }
  0x95   : > { %774 = vmatmul.bf16.gmra.mxu1 %v1250_v34  ;;  %814 = vmatmul.bf16.gmra.mxu3 %v1314_v35 }
  0xa4   : > { %690 = vmatmul.bf16.gmra.mxu0 %v1254_v44  ;;  %730 = vmatmul.bf16.gmra.mxu2 %v1318_v45 }
  0xa5   : > { %779 = vmatmul.bf16.gmra.mxu1 %v1258_v46  ;;  %819 = vmatmul.bf16.gmra.mxu3 %v1322_v47 }
  0xb1   : > { %v656_v48 = vpop.f32.mrf.mxu0 }
  0xb2   : > { %v745_v49 = vpop.f32.mrf.mxu1 }
  0xb3   : > { %v746_v50 = vadd.f32 %v745_v49, %v656_v48 }
  0xb5   : > { %v928_v56 = vadd.f32 %v1889_v51, %v746_v50 }
  0xb7   : > { %v696_v52 = vpop.f32.mrf.mxu2  ;;  %v960_v60 = vmax.f32 %v928_v56, 0.0 }
  0xb8   : > { %v785_v53 = vpop.f32.mrf.mxu3 }
  0xb9   : > { %v658_v54 = vpop.f32.mrf.mxu0  ;;  %v786_v58 = vadd.f32 %v785_v53, %v696_v52 }
  0xba   : > { %v747_v55 = vpop.f32.mrf.mxu1 }
  0xbb   : > { %v748_v57 = vadd.f32 %v747_v55, %v658_v54  ;;  %v944_v0 = vadd.f32 %v1889_v51, %v786_v58 }
  0xbd   : > { %v929_v59 = vadd.f32 %v1889_v51, %v748_v57  ;;  %v976_v6 = vmax.f32 %v944_v0, 0.0 }
  0xbf   : > { %v961_v61 = vmax.f32 %v929_v59, 0.0  ;;  %v698_v62 = vpop.f32.mrf.mxu2 }
  0xc0   : > { %v787_v63 = vpop.f32.mrf.mxu3 }
  0xc1   : > { %v1445_v1 = vpack.c.bf16 %v961_v61, %v960_v60  ;;  %v788_v2 = vadd.f32 %v787_v63, %v698_v62  ;;  %v661_v3 = vpop.f32.mrf.mxu0 }
  0xc2   : > { %v750_v4 = vpop.f32.mrf.mxu1 }
  0xc3   : > { %1446 = vst [vmem:[%s1897_s6] sm:$0xff] %v1445_v1   ;;  %v945_v5 = vadd.f32 %v1889_v51, %v788_v2  ;;  %v751_v9 = vadd.f32 %v750_v4, %v661_v3 }
  0xc5   : > { %v977_v7 = vmax.f32 %v945_v5, 0.0  ;;  %v930_v14 = vadd.f32 %v1889_v51, %v751_v9 }
  0xc7   : > { %v1485_v8 = vpack.c.bf16 %v977_v7, %v976_v6  ;;  %v701_v10 = vpop.f32.mrf.mxu2  ;;  %v962_v18 = vmax.f32 %v930_v14, 0.0 }
  0xc8   : > { %v790_v11 = vpop.f32.mrf.mxu3 }
  0xc9   : > { %1529 = vst [vmem:[%s1897_s6 + $0x40] sm:$0xff] %v1485_v8   ;;  %v663_v12 = vpop.f32.mrf.mxu0  ;;  %v791_v16 = vadd.f32 %v790_v11, %v701_v10 }
  0xca   : > { %v752_v13 = vpop.f32.mrf.mxu1 }
  0xcb   : > { %v753_v15 = vadd.f32 %v752_v13, %v663_v12  ;;  %v946_v22 = vadd.f32 %v1889_v51, %v791_v16 }
  0xcd   : > { %v931_v17 = vadd.f32 %v1889_v51, %v753_v15  ;;  %v978_v28 = vmax.f32 %v946_v22, 0.0 }
  0xcf   : > { %v963_v19 = vmax.f32 %v931_v17, 0.0  ;;  %v703_v20 = vpop.f32.mrf.mxu2 }
  0xd0   : > { %v792_v21 = vpop.f32.mrf.mxu3 }
  0xd1   : > { %v1450_v23 = vpack.c.bf16 %v963_v19, %v962_v18  ;;  %v793_v24 = vadd.f32 %v792_v21, %v703_v20  ;;  %v666_v25 = vpop.f32.mrf.mxu0 }
  0xd2   : > { %v755_v26 = vpop.f32.mrf.mxu1 }
  0xd3   : > { %1522 = vst [vmem:[%s1897_s6 + $0x8] sm:$0xff] %v1450_v23   ;;  %v947_v27 = vadd.f32 %v1889_v51, %v793_v24  ;;  %v756_v31 = vadd.f32 %v755_v26, %v666_v25 }
  0xd5   : > { %v979_v29 = vmax.f32 %v947_v27, 0.0  ;;  %v932_v36 = vadd.f32 %v1889_v51, %v756_v31 }
  0xd7   : > { %v1490_v30 = vpack.c.bf16 %v979_v29, %v978_v28  ;;  %v706_v32 = vpop.f32.mrf.mxu2  ;;  %v964_v40 = vmax.f32 %v932_v36, 0.0 }
  0xd8   : > { %v795_v33 = vpop.f32.mrf.mxu3 }
  0xd9   : > { %1530 = vst [vmem:[%s1897_s6 + $0x48] sm:$0xff] %v1490_v30   ;;  %v668_v34 = vpop.f32.mrf.mxu0  ;;  %v796_v38 = vadd.f32 %v795_v33, %v706_v32 }
  0xda   : > { %v757_v35 = vpop.f32.mrf.mxu1 }
  0xdb   : > { %v758_v37 = vadd.f32 %v757_v35, %v668_v34  ;;  %v948_v44 = vadd.f32 %v1889_v51, %v796_v38 }
  0xdd   : > { %v933_v39 = vadd.f32 %v1889_v51, %v758_v37  ;;  %v980_v50 = vmax.f32 %v948_v44, 0.0 }
  0xdf   : > { %v965_v41 = vmax.f32 %v933_v39, 0.0  ;;  %v708_v42 = vpop.f32.mrf.mxu2 }
  0xe0   : > { %v797_v43 = vpop.f32.mrf.mxu3 }
  0xe1   : > { %v1455_v45 = vpack.c.bf16 %v965_v41, %v964_v40  ;;  %v798_v46 = vadd.f32 %v797_v43, %v708_v42  ;;  %v671_v47 = vpop.f32.mrf.mxu0 }
  0xe2   : > { %v760_v48 = vpop.f32.mrf.mxu1 }
  0xe3   : > { %1523 = vst [vmem:[%s1897_s6 + $0x10] sm:$0xff] %v1455_v45   ;;  %v949_v49 = vadd.f32 %v1889_v51, %v798_v46  ;;  %v761_v54 = vadd.f32 %v760_v48, %v671_v47 }
  0xe5   : > { %v981_v52 = vmax.f32 %v949_v49, 0.0  ;;  %v934_v59 = vadd.f32 %v1889_v51, %v761_v54 }
  0xe7   : > { %v1495_v53 = vpack.c.bf16 %v981_v52, %v980_v50  ;;  %v711_v55 = vpop.f32.mrf.mxu2  ;;  %v966_v63 = vmax.f32 %v934_v59, 0.0 }
  0xe8   : > { %v800_v56 = vpop.f32.mrf.mxu3 }
  0xe9   : > { %1531 = vst [vmem:[%s1897_s6 + $0x50] sm:$0xff] %v1495_v53   ;;  %v673_v57 = vpop.f32.mrf.mxu0  ;;  %v801_v61 = vadd.f32 %v800_v56, %v711_v55 }
  0xea   : > { %v762_v58 = vpop.f32.mrf.mxu1 }
  0xeb   : > { %v763_v60 = vadd.f32 %v762_v58, %v673_v57  ;;  %v950_v3 = vadd.f32 %v1889_v51, %v801_v61 }
  0xed   : > { %v935_v62 = vadd.f32 %v1889_v51, %v763_v60  ;;  %v982_v9 = vmax.f32 %v950_v3, 0.0 }
  0xef   : > { %v967_v0 = vmax.f32 %v935_v62, 0.0  ;;  %v713_v1 = vpop.f32.mrf.mxu2 }
  0xf0   : > { %v802_v2 = vpop.f32.mrf.mxu3 }
  0xf1   : > { %v1460_v4 = vpack.c.bf16 %v967_v0, %v966_v63  ;;  %v803_v5 = vadd.f32 %v802_v2, %v713_v1  ;;  %v676_v6 = vpop.f32.mrf.mxu0 }
  0xf2   : > { %v765_v7 = vpop.f32.mrf.mxu1 }
  0xf3   : > { %1524 = vst [vmem:[%s1897_s6 + $0x18] sm:$0xff] %v1460_v4   ;;  %v951_v8 = vadd.f32 %v1889_v51, %v803_v5  ;;  %v766_v12 = vadd.f32 %v765_v7, %v676_v6 }
  0xf5   : > { %v983_v10 = vmax.f32 %v951_v8, 0.0  ;;  %v936_v17 = vadd.f32 %v1889_v51, %v766_v12 }
  0xf7   : > { %v1500_v11 = vpack.c.bf16 %v983_v10, %v982_v9  ;;  %v716_v13 = vpop.f32.mrf.mxu2  ;;  %v968_v21 = vmax.f32 %v936_v17, 0.0 }
  0xf8   : > { %v805_v14 = vpop.f32.mrf.mxu3 }
  0xf9   : > { %1532 = vst [vmem:[%s1897_s6 + $0x58] sm:$0xff] %v1500_v11   ;;  %v678_v15 = vpop.f32.mrf.mxu0  ;;  %v806_v19 = vadd.f32 %v805_v14, %v716_v13 }
  0xfa   : > { %v767_v16 = vpop.f32.mrf.mxu1 }
  0xfb   : > { %v768_v18 = vadd.f32 %v767_v16, %v678_v15  ;;  %v952_v25 = vadd.f32 %v1889_v51, %v806_v19 }
  0xfd   : > { %v937_v20 = vadd.f32 %v1889_v51, %v768_v18  ;;  %v984_v31 = vmax.f32 %v952_v25, 0.0 }
  0xff   : > { %v969_v22 = vmax.f32 %v937_v20, 0.0  ;;  %v718_v23 = vpop.f32.mrf.mxu2 }
 0x100   : > { %v807_v24 = vpop.f32.mrf.mxu3 }
 0x101   : > { %v1465_v26 = vpack.c.bf16 %v969_v22, %v968_v21  ;;  %v808_v27 = vadd.f32 %v807_v24, %v718_v23  ;;  %v681_v28 = vpop.f32.mrf.mxu0 }
 0x102   : > { %v770_v29 = vpop.f32.mrf.mxu1 }
 0x103   : > { %1525 = vst [vmem:[%s1897_s6 + $0x20] sm:$0xff] %v1465_v26   ;;  %v953_v30 = vadd.f32 %v1889_v51, %v808_v27  ;;  %v771_v34 = vadd.f32 %v770_v29, %v681_v28 }
 0x105   : > { %v985_v32 = vmax.f32 %v953_v30, 0.0  ;;  %v938_v39 = vadd.f32 %v1889_v51, %v771_v34 }
 0x107   : > { %v1505_v33 = vpack.c.bf16 %v985_v32, %v984_v31  ;;  %v721_v35 = vpop.f32.mrf.mxu2  ;;  %v970_v43 = vmax.f32 %v938_v39, 0.0 }
 0x108   : > { %v810_v36 = vpop.f32.mrf.mxu3 }
 0x109   : > { %1533 = vst [vmem:[%s1897_s6 + $0x60] sm:$0xff] %v1505_v33   ;;  %v683_v37 = vpop.f32.mrf.mxu0  ;;  %v811_v41 = vadd.f32 %v810_v36, %v721_v35 }
 0x10a   : > { %v772_v38 = vpop.f32.mrf.mxu1 }
 0x10b   : > { %v773_v40 = vadd.f32 %v772_v38, %v683_v37  ;;  %v954_v47 = vadd.f32 %v1889_v51, %v811_v41 }
 0x10d   : > { %v939_v42 = vadd.f32 %v1889_v51, %v773_v40  ;;  %v986_v54 = vmax.f32 %v954_v47, 0.0 }
 0x10f   : > { %v971_v44 = vmax.f32 %v939_v42, 0.0  ;;  %v723_v45 = vpop.f32.mrf.mxu2 }
 0x110   : > { %v812_v46 = vpop.f32.mrf.mxu3 }
 0x111   : > { %v1470_v48 = vpack.c.bf16 %v971_v44, %v970_v43  ;;  %v813_v49 = vadd.f32 %v812_v46, %v723_v45  ;;  %v686_v50 = vpop.f32.mrf.mxu0 }
 0x112   : > { %v775_v52 = vpop.f32.mrf.mxu1 }
 0x113   : > { %1526 = vst [vmem:[%s1897_s6 + $0x28] sm:$0xff] %v1470_v48   ;;  %v955_v53 = vadd.f32 %v1889_v51, %v813_v49  ;;  %v776_v57 = vadd.f32 %v775_v52, %v686_v50 }
 0x115   : > { %v987_v55 = vmax.f32 %v955_v53, 0.0  ;;  %v940_v62 = vadd.f32 %v1889_v51, %v776_v57 }
 0x117   : > { %v1510_v56 = vpack.c.bf16 %v987_v55, %v986_v54  ;;  %v726_v58 = vpop.f32.mrf.mxu2  ;;  %v972_v2 = vmax.f32 %v940_v62, 0.0 }
 0x118   : > { %v815_v59 = vpop.f32.mrf.mxu3 }
 0x119   : > { %1534 = vst [vmem:[%s1897_s6 + $0x68] sm:$0xff] %v1510_v56   ;;  %v688_v60 = vpop.f32.mrf.mxu0  ;;  %v816_v0 = vadd.f32 %v815_v59, %v726_v58 }
 0x11a   : > { %v777_v61 = vpop.f32.mrf.mxu1 }
 0x11b   : > { %v778_v63 = vadd.f32 %v777_v61, %v688_v60  ;;  %v956_v6 = vadd.f32 %v1889_v51, %v816_v0 }
 0x11d   : > { %v941_v1 = vadd.f32 %v1889_v51, %v778_v63  ;;  %v988_v12 = vmax.f32 %v956_v6, 0.0 }
 0x11f   : > { %v973_v3 = vmax.f32 %v941_v1, 0.0  ;;  %v728_v4 = vpop.f32.mrf.mxu2 }
 0x120   : > { %v817_v5 = vpop.f32.mrf.mxu3 }
 0x121   : > { %v1475_v7 = vpack.c.bf16 %v973_v3, %v972_v2  ;;  %v818_v8 = vadd.f32 %v817_v5, %v728_v4  ;;  %v691_v9 = vpop.f32.mrf.mxu0 }
 0x122   : > { %v780_v10 = vpop.f32.mrf.mxu1 }
 0x123   : > { %1527 = vst [vmem:[%s1897_s6 + $0x30] sm:$0xff] %v1475_v7   ;;  %v957_v11 = vadd.f32 %v1889_v51, %v818_v8  ;;  %v781_v15 = vadd.f32 %v780_v10, %v691_v9 }
 0x125   : > { %v989_v13 = vmax.f32 %v957_v11, 0.0  ;;  %v942_v20 = vadd.f32 %v1889_v51, %v781_v15 }
 0x127   : > { %v1515_v14 = vpack.c.bf16 %v989_v13, %v988_v12  ;;  %v731_v16 = vpop.f32.mrf.mxu2  ;;  %v974_v24 = vmax.f32 %v942_v20, 0.0 }
 0x128   : > { %v820_v17 = vpop.f32.mrf.mxu3 }
 0x129   : > { %1535 = vst [vmem:[%s1897_s6 + $0x70] sm:$0xff] %v1515_v14   ;;  %v693_v18 = vpop.f32.mrf.mxu0  ;;  %v821_v22 = vadd.f32 %v820_v17, %v731_v16 }
 0x12a   : > { %v782_v19 = vpop.f32.mrf.mxu1 }
 0x12b   : > { %v783_v21 = vadd.f32 %v782_v19, %v693_v18  ;;  %v958_v28 = vadd.f32 %v1889_v51, %v821_v22 }
 0x12d   : > { %v943_v23 = vadd.f32 %v1889_v51, %v783_v21  ;;  %v990_v32 = vmax.f32 %v958_v28, 0.0 }
 0x12f   : > { %v975_v25 = vmax.f32 %v943_v23, 0.0  ;;  %v733_v26 = vpop.f32.mrf.mxu2 }
 0x130   : > { %v822_v27 = vpop.f32.mrf.mxu3 }
 0x131   : > { %v1480_v29 = vpack.c.bf16 %v975_v25, %v974_v24  ;;  %v823_v30 = vadd.f32 %v822_v27, %v733_v26 }
 0x133   : > { %1528 = vst [vmem:[%s1897_s6 + $0x38] sm:$0xff] %v1480_v29   ;;  %v959_v31 = vadd.f32 %v1889_v51, %v823_v30 }
 0x135   : > { %v991_v33 = vmax.f32 %v959_v31, 0.0 }
 0x137   : > { %v1520_v34 = vpack.c.bf16 %v991_v33, %v990_v32 }
 0x139   : > { %1536 = vst [vmem:[%s1897_s6 + $0x78] sm:$0xff] %v1520_v34  }
 0x13a   : > { %1638 = shalt.err (!%p1635_p5)
}
 0x13b   : > { %s1691_s30 = smov 64   ;;  %s1692_s4 = smov 4  }
 0x13c   : > { %1553 = dma.vmem_to_hbm [thread:$0]  (%p1753_p4), %s1071_s18, 2048, %s1073_s15, %s1057_s19, %s1691_s30, %s1691_s30, %s1692_s4  }
 0x13d PF: > { %p1559_p6 = scmp.ge.s32.totalorder %s1689_s17, 2  ;;  %s1087_s5 = sand.u32 1, %s1669_s12  }
 0x13e   : > { %s1088_s6 = scalar_lea.sflag [#allocation4], %s1087_s5 }
 0x13f   : > { %p1556_p7 = pnand %p1559_p6, %p1760_p8 }
 0x141   : > { %p1557_p9 = pneg %p1556_p7 }
 0x143   : > { %1664 = dma.done.wait (%p1557_p9), %s1088_s6, 2048  }
 0x144   : > { %1666 = vsyncadd (%p1557_p9), %s1088_s6, 4294965248  ;;  %s16_s17 = sadd.s32 1, %s1689_s17   ;;  %s1989_s12 = smov %s1673_s13 }
 0x145   : > { %p13_p10 = scmp.ge.s32.totalorder %s16_s17, 4   ;;  %s1990_s13 = smov %s1677_s14 }
 0x146   : > { %s1991_s14 = smov %s1766_s25  ;;  %s1992_s15 = smov %s1685_s16 }
 0x147   : > { %s1993_s16 = smov %s1995_s20  ;;  %15 = sbr.rel (!%p13_p10) target bundleno = 4 (0x4), region = 81 }
 0x14c   :  { %1094 = vsyncpa [#allocation4], 1 }
 0x14d   :  { %1096 = vsyncpa [#allocation4 + $0x1], 1 }

</bundles_post_ra>
